<compile_context>
chip_gen: v6e
topology: v6e:2x2x1
jax: 0.10.0
libtpu: 0.0.40
codegen_flags: <defaults>
</compile_context>

<pallas_src>
import jax
import jax.numpy as jnp
from jax.experimental import pallas as pl
from jax.experimental.pallas import tpu as pltpu


def _round_up(x, m):
    return ((x + m - 1) // m) * m


def _masked_ce_partial_kernel(logits_ref, labels_ref, out_ref):
    """Per-tile partial CE sum / valid count, written to a lane-dense block.

    logits_ref: (TN, V)  float32/bfloat16
    labels_ref: (TN, 1)  int32 (-1 == ignore)
    out_ref:    (1, 8, 128) float32; [0,0,0]=sum of per-row CE, [0,0,1]=count
    """
    logits = logits_ref[...].astype(jnp.float32)            # (TN, V)
    labels = labels_ref[...]                                 # (TN, 1)

    # Numerically-stable CE. Compute `shifted` once so both vocab-axis
    # reductions (exp-sum and label pick) stream the same values.
    m = jnp.max(logits, axis=-1, keepdims=True)              # (TN, 1)
    shifted = logits - m                                     # (TN, V)

    col = jax.lax.broadcasted_iota(jnp.int32, logits.shape, 1)
    onehot = col == labels                                   # (TN, V)

    sum_e = jnp.sum(jnp.exp(shifted), axis=-1, keepdims=True)            # (TN, 1)
    picked_shifted = jnp.sum(jnp.where(onehot, shifted, 0.0),
                             axis=-1, keepdims=True)                     # (TN, 1)

    valid = labels != -1                                     # (TN, 1)
    # loss = lse - logits[label] = log(sum_e) - (logits[label] - m)
    per_row = jnp.where(valid, jnp.log(sum_e) - picked_shifted, 0.0)

    tile_sum = jnp.sum(per_row)
    tile_cnt = jnp.sum(valid.astype(jnp.float32))

    sub = jax.lax.broadcasted_iota(jnp.int32, (1, 8, 128), 1)
    lane = jax.lax.broadcasted_iota(jnp.int32, (1, 8, 128), 2)
    first_row = sub == 0
    out_ref[...] = jnp.where(
        first_row & (lane == 0), tile_sum,
        jnp.where(first_row & (lane == 1), tile_cnt, 0.0))


def masked_cross_entropy_sum(logits, labels, tile_n=None,
                             vmem_limit_bytes=48 * 1024 * 1024):
    """Returns (sum of CE over valid rows, number of valid rows) via Pallas.

    logits: (N, V) float32 or bfloat16
    labels: (N,)   int (-1 == ignore_index)
    """
    N, V = logits.shape
    itemsize = jnp.dtype(logits.dtype).itemsize

    if tile_n is None:
        # Pick the largest row tile whose double-buffered logits block fits a
        # ~32 MiB budget (fits v7x's 64 MiB physical VMEM with headroom, and
        # under the raised scoped limit on v5e/v6e). Multiple of 16 so both
        # f32 (8-sublane) and bf16 (16-sublane) tiles are legal.
        budget = 32 * 1024 * 1024
        t = budget // (2 * max(V, 128) * itemsize)
        t = max(16, min(512, (t // 16) * 16))
        tile_n = min(t, _round_up(N, 16))
    else:
        tile_n = max(16, (tile_n // 16) * 16)

    # Pad rows to a tile multiple (padded rows carry label=-1 -> ignored),
    # instead of falling back to an untileable full-N block.
    N_pad = _round_up(N, tile_n)
    labels = labels.astype(jnp.int32)
    if N_pad != N:
        logits = jnp.pad(logits, ((0, N_pad - N), (0, 0)))
        labels = jnp.pad(labels, ((0, N_pad - N),), constant_values=-1)
    labels2d = labels.reshape(N_pad, 1)
    num_tiles = N_pad // tile_n

    # NOTE: the vocab axis uses the full array extent as the block dim, which
    # is legal even when V is not a multiple of 128 (Mosaic masks the ragged
    # last vreg); pad vocab to a 128 multiple upstream for fully lane-dense
    # loads if desired.
    out = pl.pallas_call(
        _masked_ce_partial_kernel,
        out_shape=jax.ShapeDtypeStruct((num_tiles, 8, 128), jnp.float32),
        grid_spec=pltpu.PrefetchScalarGridSpec(
            num_scalar_prefetch=0,
            grid=(num_tiles,),
            in_specs=[
                pl.BlockSpec((tile_n, V), lambda i: (i, 0)),
                pl.BlockSpec((tile_n, 1), lambda i: (i, 0)),
            ],
            out_specs=pl.BlockSpec((1, 8, 128), lambda i: (i, 0, 0)),
        ),
        compiler_params=pltpu.CompilerParams(
            dimension_semantics=("parallel",),
            vmem_limit_bytes=vmem_limit_bytes,
        ),
    )(logits, labels2d)

    return jnp.sum(out[:, 0, 0]), jnp.sum(out[:, 0, 1])


def _ce_mean_ignore_jnp(logits, labels):
    """Plain-JAX mean cross-entropy with ignore_index=-1 (tiny NSP head)."""
    logits = logits.astype(jnp.float32)
    labels = labels.reshape(-1)
    valid = labels != -1
    lse = jax.nn.logsumexp(logits, axis=-1)
    safe = jnp.where(valid, labels, 0)
    picked = jnp.take_along_axis(logits, safe[:, None], axis=-1)[:, 0]
    loss = jnp.where(valid, lse - picked, 0.0)
    return jnp.sum(loss) / jnp.maximum(jnp.sum(valid).astype(jnp.float32), 1.0)


class BertPretrainingCriterion:
    """JAX/Pallas port of the PyTorch BertPretrainingCriterion forward."""

    def __init__(self, vocab_size, sequence_output_is_dense=False):
        self.vocab_size = vocab_size
        self.sequence_output_is_dense = sequence_output_is_dense
        # TODO(synk): sequence_output_is_dense=True path needs a dynamic-shape
        # boolean gather of labels; only the default dense-scores path is
        # implemented in the kernel.

    def __call__(self, prediction_scores, seq_relationship_score,
                 masked_lm_labels, next_sentence_labels):
        # Masked-LM loss: CrossEntropyLoss(ignore_index=-1), mean over valid.
        # (If upstream emits bf16 logits they can be fed directly — the kernel
        # upcasts to f32 internally and the tiling supports 16-row sublanes.)
        mlm_logits = prediction_scores.reshape(-1, self.vocab_size)
        mlm_labels = masked_lm_labels.reshape(-1)
        mlm_sum, mlm_cnt = masked_cross_entropy_sum(mlm_logits, mlm_labels)
        masked_lm_loss = mlm_sum / jnp.maximum(mlm_cnt, 1.0)

        # Next-sentence loss (2 classes): trivial, computed in plain jnp
        # instead of paying a kernel launch for a 2-lane problem.
        next_sentence_loss = _ce_mean_ignore_jnp(
            seq_relationship_score.reshape(-1, 2),
            next_sentence_labels.reshape(-1))

        return masked_lm_loss + next_sentence_loss


def _reference_loss(prediction_scores, seq_relationship_score,
                    masked_lm_labels, next_sentence_labels, vocab_size):
    """Pure-JAX reference for correctness check."""
    def ce(logits, labels):
        valid = labels != -1
        lse = jax.nn.logsumexp(logits.astype(jnp.float32), axis=-1)
        safe = jnp.where(valid, labels, 0)
        picked = jnp.take_along_axis(
            logits.astype(jnp.float32), safe[:, None], axis=-1)[:, 0]
        loss = jnp.where(valid, lse - picked, 0.0)
        return jnp.sum(loss) / jnp.maximum(jnp.sum(valid), 1)

    mlm = ce(prediction_scores.reshape(-1, vocab_size), masked_lm_labels.reshape(-1))
    nsp = ce(seq_relationship_score.reshape(-1, 2), next_sentence_labels.reshape(-1))
    return mlm + nsp


if __name__ == "__main__":
    batch, seq, vocab = 2, 8, 512

    key = jax.random.PRNGKey(0)
    k1, k2, k3, k4, k5 = jax.random.split(key, 5)

    prediction_scores = jax.random.normal(k1, (batch, seq, vocab), dtype=jnp.float32)
    seq_relationship_score = jax.random.normal(k2, (batch, 2), dtype=jnp.float32)

    # masked_lm_labels: mostly -1 (ignored), a few real vocab ids
    labels_full = jax.random.randint(k3, (batch, seq), 0, vocab, dtype=jnp.int32)
    mask = jax.random.bernoulli(k4, p=0.3, shape=(batch, seq))
    masked_lm_labels = jnp.where(mask, labels_full, jnp.int32(-1))
    next_sentence_labels = jax.random.randint(k5, (batch,), 0, 2, dtype=jnp.int32)

    criterion = BertPretrainingCriterion(vocab_size=vocab)
    total_loss = criterion(prediction_scores, seq_relationship_score,
                           masked_lm_labels, next_sentence_labels)
    total_loss = jax.block_until_ready(total_loss)

    ref = _reference_loss(prediction_scores, seq_relationship_score,
                          masked_lm_labels, next_sentence_labels, vocab)
    assert jnp.allclose(total_loss, ref, rtol=1e-5, atol=1e-5), (total_loss, ref)

    print("KERNEL_OK")
</pallas_src>

<mosaic_0001>
module attributes {stable_mosaic.version = 11 : i64} {
  func.func @_masked_ce_partial_kernel(%arg0: i32, %arg1: memref<16x512xf32, #tpu.memory_space<vmem>>, %arg2: memref<16x1xi32, #tpu.memory_space<vmem>>, %arg3: memref<1x8x128xf32, #tpu.memory_space<vmem>>) attributes {dimension_semantics = [#tpu.dimension_semantics<parallel>], iteration_bounds = array<i64: 1>, scalar_prefetch = 0 : i64, scratch_operands = 0 : i64, tpu.core_type = #tpu.core_type<tc>, window_params = [{transform_indices = @transform_0, window_bounds = array<i64: 16, 512>}, {transform_indices = @transform_1, window_bounds = array<i64: 16, 1>}, {transform_indices = @transform_2, window_bounds = array<i64: 1, 8, 128>}]} {
    %c0 = arith.constant 0 : index
    %c0_0 = arith.constant 0 : index
    %0 = vector.load %arg1[%c0, %c0_0] : memref<16x512xf32, #tpu.memory_space<vmem>>, vector<16x512xf32>
    %c0_1 = arith.constant 0 : index
    %c0_2 = arith.constant 0 : index
    %1 = vector.load %arg2[%c0_1, %c0_2] : memref<16x1xi32, #tpu.memory_space<vmem>>, vector<16x1xi32>
    %cst = arith.constant dense<0xFF800000> : vector<16xf32>
    %2 = vector.multi_reduction <maximumf>, %0, %cst [1] : vector<16x512xf32> to vector<16xf32>
    %3 = vector.shape_cast %2 : vector<16xf32> to vector<16x1xf32>
    %4 = vector.broadcast %3 : vector<16x1xf32> to vector<16x512xf32>
    %5 = arith.subf %0, %4 : vector<16x512xf32>
    %6 = tpu.iota {dimensions = array<i32: 1>} : vector<16x512xi32>
    %7 = vector.broadcast %1 : vector<16x1xi32> to vector<16x512xi32>
    %8 = arith.cmpi eq, %6, %7 : vector<16x512xi32>
    %9 = math.exp %5 : vector<16x512xf32>
    %cst_3 = arith.constant dense<0.000000e+00> : vector<16xf32>
    %10 = vector.multi_reduction <add>, %9, %cst_3 [1] : vector<16x512xf32> to vector<16xf32>
    %11 = vector.shape_cast %10 : vector<16xf32> to vector<16x1xf32>
    %cst_4 = arith.constant 0.000000e+00 : f32
    %12 = vector.broadcast %cst_4 : f32 to vector<16x512xf32>
    %13 = arith.select %8, %5, %12 : vector<16x512xi1>, vector<16x512xf32>
    %cst_5 = arith.constant dense<0.000000e+00> : vector<16xf32>
    %14 = vector.multi_reduction <add>, %13, %cst_5 [1] : vector<16x512xf32> to vector<16xf32>
    %15 = vector.shape_cast %14 : vector<16xf32> to vector<16x1xf32>
    %c-1_i32 = arith.constant -1 : i32
    %16 = vector.broadcast %c-1_i32 : i32 to vector<16x1xi32>
    %17 = arith.cmpi ne, %1, %16 : vector<16x1xi32>
    %18 = math.log %11 : vector<16x1xf32>
    %19 = arith.subf %18, %15 : vector<16x1xf32>
    %cst_6 = arith.constant 0.000000e+00 : f32
    %20 = vector.broadcast %cst_6 : f32 to vector<16x1xf32>
    %21 = arith.select %17, %19, %20 : vector<16x1xi1>, vector<16x1xf32>
    %22 = vector.shape_cast %21 : vector<16x1xf32> to vector<1x16x1xf32>
    %cst_7 = arith.constant dense<0.000000e+00> : vector<1xf32>
    %23 = vector.multi_reduction <add>, %22, %cst_7 [1, 2] : vector<1x16x1xf32> to vector<1xf32>
    %24 = vector.shape_cast %23 : vector<1xf32> to vector<1x1x1xf32>
    %25 = vector.extract %24[0, 0, 0] : f32 from vector<1x1x1xf32>
    %26 = arith.extui %17 : vector<16x1xi1> to vector<16x1xi32>
    %27 = arith.sitofp %26 : vector<16x1xi32> to vector<16x1xf32>
    %28 = vector.shape_cast %27 : vector<16x1xf32> to vector<1x16x1xf32>
    %cst_8 = arith.constant dense<0.000000e+00> : vector<1xf32>
    %29 = vector.multi_reduction <add>, %28, %cst_8 [1, 2] : vector<1x16x1xf32> to vector<1xf32>
    %30 = vector.shape_cast %29 : vector<1xf32> to vector<1x1x1xf32>
    %31 = vector.extract %30[0, 0, 0] : f32 from vector<1x1x1xf32>
    %32 = tpu.iota {dimensions = array<i32: 1>} : vector<1x8x128xi32>
    %33 = tpu.iota {dimensions = array<i32: 2>} : vector<1x8x128xi32>
    %c0_i32 = arith.constant 0 : i32
    %34 = vector.broadcast %c0_i32 : i32 to vector<1x8x128xi32>
    %35 = arith.cmpi eq, %32, %34 : vector<1x8x128xi32>
    %c0_i32_9 = arith.constant 0 : i32
    %36 = vector.broadcast %c0_i32_9 : i32 to vector<1x8x128xi32>
    %37 = arith.cmpi eq, %33, %36 : vector<1x8x128xi32>
    %38 = arith.andi %35, %37 : vector<1x8x128xi1>
    %c1_i32 = arith.constant 1 : i32
    %39 = vector.broadcast %c1_i32 : i32 to vector<1x8x128xi32>
    %40 = arith.cmpi eq, %33, %39 : vector<1x8x128xi32>
    %41 = arith.andi %35, %40 : vector<1x8x128xi1>
    %cst_10 = arith.constant 0.000000e+00 : f32
    %42 = vector.broadcast %31 : f32 to vector<1x8x128xf32>
    %43 = vector.broadcast %cst_10 : f32 to vector<1x8x128xf32>
    %44 = arith.select %41, %42, %43 : vector<1x8x128xi1>, vector<1x8x128xf32>
    %45 = vector.broadcast %25 : f32 to vector<1x8x128xf32>
    %46 = arith.select %38, %45, %44 : vector<1x8x128xi1>, vector<1x8x128xf32>
    %c0_11 = arith.constant 0 : index
    %c0_12 = arith.constant 0 : index
    %c0_13 = arith.constant 0 : index
    %47 = vector.load %arg3[%c0_11, %c0_12, %c0_13] : memref<1x8x128xf32, #tpu.memory_space<vmem>>, vector<1x8x128xf32>
    tpu.vector_store %arg3[%c0_11, %c0_12, %c0_13], %46 {strides = array<i32>} : memref<1x8x128xf32, #tpu.memory_space<vmem>>, vector<1x8x128xf32>,
    return
  }
  func.func @transform_0(%arg0: i32) -> (i32, i32) {
    %c0_i32 = arith.constant 0 : i32
    %c0_i32_0 = arith.constant 0 : i32
    return %arg0, %c0_i32 : i32, i32
  }
  func.func @transform_1(%arg0: i32) -> (i32, i32) {
    %c0_i32 = arith.constant 0 : i32
    %c0_i32_0 = arith.constant 0 : i32
    return %arg0, %c0_i32 : i32, i32
  }
  func.func @transform_2(%arg0: i32) -> (i32, i32, i32) {
    %c0_i32 = arith.constant 0 : i32
    %c0_i32_0 = arith.constant 0 : i32
    %c0_i32_1 = arith.constant 0 : i32
    return %arg0, %c0_i32, %c0_i32_0 : i32, i32, i32
  }
}

</mosaic_0001>

<bundles_post_ra>
// kernel: tpu_custom_call.1
= control target key start
LH: loop header
LB: loop body
LE: loop exit
PB: predicated region body
PF: predicated region fallthrough
CT: control target
= control target key end

     0   :  { %7 = vsyncpa [#allocation3], 0  ;;  %s325_s0 = inlined_call_operand.hbm [shape: f32[16,512], index: 0, kind: input, shape index: {}]   ;;  %s326_s1 = inlined_call_operand.vmem [shape: s32[16,1], index: 1, kind: input, shape index: {}]   ;;  %s327_s2 = inlined_call_operand.hbm [shape: f32[1,8,128], index: 2, kind: output, shape index: {}]  }
   0x1   :  { %8 = vsyncpa [#allocation4], 0  ;;  %s261_s9 = smov [#allocation2]  }
   0x2   :  { %s14_s10 = sshll.u32 %s261_s9, 4  ;;  %s15_s10 = int_to_ptr.vmem [resolvable:$true] %s14_s10 }
   0x3   :  { %s225_s11 = scalar_lea.vmem %s15_s10, 1024  ;;  %p230_p1 = scmp.lt.s32.totalorder %s15_s10, %s15_s10 }
   0x4   :  { %p226_p0 = scmp.ne.s32.totalorder %s15_s10, %s225_s11  ;;  %p231_p2 = scmp.lt.s32.totalorder %s225_s11, %s225_s11 }
   0x6   :  { %p232_p3 = por %p231_p2, %p230_p1 }
   0x8   :  { %p233_p4 = pnand %p232_p3, %p226_p0 }
   0xa   :  { %236 = shalt.err (!%p233_p4)
}
   0xb   :  { %s262_s12 = smov 512   ;;  %s263_s13 = smov 32  }
   0xc   :  { %20 = dma.hbm_to_vmem [thread:$0]  %s325_s0, 1024, %s15_s10, [#allocation3], %s262_s12, %s262_s12, %s263_s13  }
   0xd   :  { %257 = dma.done.wait [#allocation3], 1024  }
   0xe   :  { %258 = vsyncadd [#allocation3], 4294966272  ;;  %v264_v0 = vmov 0   ;;  %v26_v1 = vld [vmem:[#allocation2] sm:$0xff]  ;;  %v27_v2 = vld [vmem:[#allocation2 + $0x8] sm:$0xff]  ;;  %v54_v22 = vlaneseq  ;;  %vm127_vm10 = vcmask 7168  }
   0xf   :  { %195 = vset.pattern.permute.xlu1 %v264_v0  ;;  %196 = vset.pattern.permute.xlu0 %v264_v0  ;;  %v28_v3 = vld [vmem:[#allocation2 + $0x10] sm:$0xff]  ;;  %v29_v4 = vld [vmem:[#allocation2 + $0x18] sm:$0xff]  ;;  %v30_v6 = vld [vmem:[#allocation2 + $0x20] sm:$0xff]  ;;  %s266_s19 = smov [#allocation5]  }
  0x10   :  { %v36_v5 = vmax.f32 %v26_v1, %v28_v3  ;;  %v31_v7 = vld [vmem:[#allocation2 + $0x28] sm:$0xff]  ;;  %v37_v8 = vmax.f32 %v27_v2, %v29_v4  ;;  %v32_v9 = vld [vmem:[#allocation2 + $0x30] sm:$0xff]  ;;  %v33_v10 = vld [vmem:[#allocation2 + $0x38] sm:$0xff]  ;;  %v298_v31 = vand.u32 127, %v54_v22  ;;  %s174_s20 = sshll.u32 %s266_s19, 4  ;;  %s175_s20 = int_to_ptr.vmem [resolvable:$true] %s174_s20 }
  0x11   :  { %v288_v11 = vld [vmem:[%s326_s1] sm:$0xff]  ;;  %v41_v12 = vmax.f32 %v30_v6, %v32_v9  ;;  %v42_v13 = vmax.f32 %v31_v7, %v33_v10  ;;  %v294_v15 = vld [vmem:[%s326_s1 + $0x8] sm:$0xff]  ;;  %s237_s22 = scalar_lea.vmem %s175_s20, 128  ;;  %p242_p6 = scmp.lt.s32.totalorder %s175_s20, %s175_s20 }
  0x12   :  { %60 = vperm.xlu1 %195, %v288_v11   ;;  %v38_v14 = vmax.f32 %v36_v5, %v37_v8  ;;  %v56_v37 = vadd.s32 128, %v298_v31  ;;  %v57_v40 = vadd.s32 256, %v298_v31  ;;  %v58_v45 = vadd.s32 384, %v298_v31  ;;  %p238_p5 = scmp.ne.s32.totalorder %s175_s20, %s237_s22  ;;  %p243_p7 = scmp.lt.s32.totalorder %s237_s22, %s237_s22 }
  0x13   :  { %v43_v16 = vmax.f32 %v41_v12, %v42_v13  ;;  %vm117_vm8 = vcmp.ne.s32.totalorder %v288_v11, 4294967295  ;;  %vm118_vm9 = vcmp.ne.s32.totalorder %v294_v15, 4294967295  ;;  %vm161_vm12 = vcmp.eq.s32.totalorder %v298_v31, 1 }
  0x14   :  { %39 = vmax.xlane.f32.xlu0 %v38_v14  ;;  %vm159_vm13 = vcmp.eq.s32.totalorder %v298_v31, 0  ;;  %p244_p8 = por %p243_p7, %p242_p6 }
  0x16   :  { %63 = vperm.xlu1 %195, %v294_v15   ;;  %p245_p9 = pnand %p244_p8, %p238_p5 }
  0x18   :  { %44 = vmax.xlane.f32.xlu0 %v43_v16 }
  0x8d   :  { %v61_v36 = vpop.permute.xlu1 %60 }
  0x8e   :  { %vm65_vm0 = vcmp.eq.s32.totalorder %v298_v31, %v61_v36  ;;  %vm66_vm1 = vcmp.eq.s32.totalorder %v56_v37, %v61_v36  ;;  %vm67_vm4 = vcmp.eq.s32.totalorder %v57_v40, %v61_v36  ;;  %vm68_vm5 = vcmp.eq.s32.totalorder %v58_v45, %v61_v36 }
  0x91   :  { %v64_v39 = vpop.permute.xlu1 %63 }
  0x92   :  { %vm69_vm2 = vcmp.eq.s32.totalorder %v298_v31, %v64_v39  ;;  %vm70_vm3 = vcmp.eq.s32.totalorder %v56_v37, %v64_v39  ;;  %vm71_vm6 = vcmp.eq.s32.totalorder %v57_v40, %v64_v39  ;;  %vm72_vm7 = vcmp.eq.s32.totalorder %v58_v45, %v64_v39 }
  0x9d   :  { %v40_v17 = vpop.xlane.xlu0 %39 }
  0x9e   :  { %v46_v18 = vsub.f32 %v26_v1, %v40_v17  ;;  %v47_v19 = vsub.f32 %v27_v2, %v40_v17  ;;  %v48_v20 = vsub.f32 %v28_v3, %v40_v17  ;;  %v49_v21 = vsub.f32 %v29_v4, %v40_v17 }
  0xa0   :  { %v73_v23 = vmul.f32 1.442695, %v46_v18  ;;  %v75_v24 = vmul.f32 1.442695, %v47_v19  ;;  %v77_v25 = vmul.f32 1.442695, %v48_v20 }
  0xa1   :  { %v79_v26 = vmul.f32 1.442695, %v49_v21  ;;  %v45_v27 = vpop.xlane.xlu0 %44  ;;  %v99_v41 = vsel %vm65_vm0, %v46_v18, 0.0  ;;  %v100_v42 = vsel %vm66_vm1, %v47_v19, 0.0  ;;  %v101_v55 = vsel %vm67_vm4, %v48_v20, 0.0 }
  0xa2   :  { %197 = vpow2.f32 %v73_v23  ;;  %v50_v28 = vsub.f32 %v30_v6, %v45_v27  ;;  %v51_v29 = vsub.f32 %v31_v7, %v45_v27  ;;  %v52_v30 = vsub.f32 %v32_v9, %v45_v27 }
  0xa3   :  { %199 = vpow2.f32 %v75_v24  ;;  %v53_v32 = vsub.f32 %v33_v10, %v45_v27  ;;  %v107_v48 = vadd.f32 %v100_v42, %v99_v41  ;;  %v102_v63 = vsel %vm68_vm5, %v49_v21, 0.0 }
  0xa4   :  { %201 = vpow2.f32 %v77_v25  ;;  %v81_v33 = vmul.f32 1.442695, %v50_v28  ;;  %v83_v34 = vmul.f32 1.442695, %v51_v29  ;;  %v85_v35 = vmul.f32 1.442695, %v52_v30 }
  0xa5   :  { %203 = vpow2.f32 %v79_v26  ;;  %v87_v38 = vmul.f32 1.442695, %v53_v32  ;;  %v103_v50 = vsel %vm69_vm2, %v50_v28, 0.0  ;;  %v104_v51 = vsel %vm70_vm3, %v51_v29, 0.0 }
  0xa6   :  { %205 = vpow2.f32 %v81_v33  ;;  %v108_v57 = vadd.f32 %v107_v48, %v101_v55  ;;  %v112_v59 = vadd.f32 %v104_v51, %v103_v50  ;;  %v105_v0 = vsel %vm71_vm6, %v52_v30, 0.0 }
  0xa7   :  { %207 = vpow2.f32 %v83_v34  ;;  %v106_v4 = vsel %vm72_vm7, %v53_v32, 0.0  ;;  %v265_v6 = vmov 0.0  }
  0xa8   :  { %209 = vpow2.f32 %v85_v35  ;;  %v109_v1 = vadd.f32 %v108_v57, %v102_v63  ;;  %v113_v3 = vadd.f32 %v112_v59, %v105_v0  ;;  %v183_v7 = vsel %vm117_vm8, 1.0, %v265_v6 }
  0xa9   :  { %211 = vpow2.f32 %v87_v38  ;;  %v184_v8 = vsel %vm118_vm9, 1.0, %v265_v6  ;;  %v144_v9 = vsel %vm127_vm10, %v183_v7, 0.0 }
  0xaa   :  { %v114_v5 = vadd.f32 %v113_v3, %v106_v4  ;;  %v145_v10 = vsel %vm127_vm10, %v184_v8, 0.0 }
  0xab   :  { %v146_v12 = vadd.f32 %v145_v10, %v144_v9 }
  0xaf   :  { %v198_v43 = vpop.eup %197 }
  0xb0   :  { %v200_v44 = vpop.eup %199 }
  0xb1   :  { %v202_v46 = vpop.eup %201  ;;  %v89_v47 = vadd.f32 %v200_v44, %v198_v43  ;;  %v157_v43 = vshrl.u32 %v54_v22, 7 }
  0xb2   :  { %v204_v49 = vpop.eup %203 }
  0xb3   :  { %v206_v52 = vpop.eup %205  ;;  %v90_v53 = vadd.f32 %v202_v46, %v89_v47  ;;  %vm158_vm11 = vcmp.eq.s32.totalorder %v157_v43, 0 }
  0xb4   :  { %v208_v54 = vpop.eup %207  ;;  %vm162_vm14 = vmand %vm158_vm11, %vm161_vm12 }
  0xb5   :  { %v91_v56 = vadd.f32 %v204_v49, %v90_v53  ;;  %v94_v58 = vadd.f32 %v208_v54, %v206_v52  ;;  %v210_v60 = vpop.eup %209  ;;  %vm160_vm15 = vmand %vm158_vm11, %vm159_vm13 }
  0xb6   :  { %v212_v62 = vpop.eup %211 }
  0xb7   :  { %92 = vadd.xlane.f32.xlu0 %v91_v56  ;;  %v95_v61 = vadd.f32 %v210_v60, %v94_v58 }
  0xb9   :  { %v96_v2 = vadd.f32 %v212_v62, %v95_v61 }
  0xbb   :  { %110 = vadd.xlane.f32.xlu0 %v109_v1  ;;  %97 = vadd.xlane.f32.xlu1 %v96_v2 }
  0xbf   :  { %115 = vadd.xlane.f32.xlu0 %v114_v5 }
 0x140   :  { %v93_v13 = vpop.xlane.xlu0 %92 }
 0x141   :  { %213 = vlog2.f32 %v93_v13 }
 0x144   :  { %v98_v14 = vpop.xlane.xlu1 %97  ;;  %v111_v17 = vpop.xlane.xlu0 %110 }
 0x145   :  { %215 = vlog2.f32 %v98_v14 }
 0x148   :  { %v116_v23 = vpop.xlane.xlu0 %115 }
 0x14e   :  { %v214_v16 = vpop.eup %213 }
 0x14f   :  { %v120_v18 = vmul.f32 0.6931472, %v214_v16 }
 0x151   :  { %v123_v19 = vsub.f32 %v120_v18, %v111_v17 }
 0x152   :  { %v216_v20 = vpop.eup %215 }
 0x153   :  { %v122_v21 = vmul.f32 0.6931472, %v216_v20  ;;  %v125_v24 = vsel %vm117_vm8, %v123_v19, 0.0 }
 0x154   :  { %v128_v27 = vsel %vm127_vm10, %v125_v24, 0.0 }
 0x155   :  { %v124_v25 = vsub.f32 %v122_v21, %v116_v23 }
 0x157   :  { %v126_v26 = vsel %vm118_vm9, %v124_v25, 0.0 }
 0x158   :  { %v129_v28 = vsel %vm127_vm10, %v126_v26, 0.0 }
 0x159   :  { %v130_v29 = vadd.f32 %v129_v28, %v128_v27 }
 0x15b   :  { %131 = vadd.xlane.f32.xlu0 %v130_v29 }
 0x15f   :  { %147 = vadd.xlane.f32.xlu0 %v146_v12 }
 0x1e4   :  { %v132_v30 = vpop.xlane.xlu0 %131 }
 0x1e5   :  { %v133_v32 = vrot.slane %v132_v30, 4 }
 0x1e7   :  { %v134_v33 = vadd.f32 %v133_v32, %v132_v30 }
 0x1e8   :  { %v148_v34 = vpop.xlane.xlu0 %147 }
 0x1e9   :  { %v135_v35 = vrot.slane %v134_v33, 2  ;;  %v149_v36 = vrot.slane %v148_v34, 4 }
 0x1eb   :  { %v150_v37 = vadd.f32 %v149_v36, %v148_v34  ;;  %v136_v11 = vadd.f32 %v135_v35, %v134_v33 }
 0x1ed   :  { %v151_v38 = vrot.slane %v150_v37, 2  ;;  %v137_v39 = vrot.slane %v136_v11, 1 }
 0x1ef   :  { %v152_v40 = vadd.f32 %v151_v38, %v150_v37  ;;  %v138_v15 = vadd.f32 %v137_v39, %v136_v11 }
 0x1f1   :  { %185 = vpush %v138_v15  ;;  %v153_v41 = vrot.slane %v152_v40, 1 }
 0x1f3   :  { %v154_v42 = vadd.f32 %v153_v41, %v152_v40 }
 0x1f5   :  { %187 = vpush %v154_v42 }
 0x222   :  { %s186_s1 = spop %185 }
 0x223   :  { %v165_v45 = vstv %s186_s1 }
 0x226   :  { %s188_s21 = spop %187 }
 0x227   :  { %v163_v44 = vstv %s188_s21 }
 0x228   :  { %v164_v46 = vsel %vm162_vm14, %v163_v44, 0.0 }
 0x229   :  { %v166_v47 = vsel %vm160_vm15, %v165_v45, %v164_v46 }
 0x22a   :  { %167 = vst [vmem:[#allocation5] sm:$0xff] %v166_v47 }
 0x22b   :  { %248 = shalt.err (!%p245_p9)
}
 0x22c   :  { %177 = dma.vmem_to_hbm [thread:$0]  %s175_s20, 128, %s327_s2, [#allocation4]  }
 0x22d   :  { %259 = dma.done.wait [#allocation4], 128  }
 0x22e   :  { %260 = vsyncadd [#allocation4], 4294967168 }
 0x22f   :  { %181 = vsyncpa [#allocation3], 1 }
 0x230   :  { %182 = vsyncpa [#allocation4], 1 }

</bundles_post_ra>
